<compile_context>
chip_gen: v6e
topology: v6e:2x2x1
jax: 0.10.0
libtpu: 0.0.40
codegen_flags: <defaults>
</compile_context>

<pallas_src>
import jax
import jax.numpy as jnp
import numpy as np
from jax.experimental import pallas as pl
from jax.experimental.pallas import tpu as pltpu

# ---- small, module-consistent config ------------------------------------
BATCH = 2
CONTEXT = 8            # T  (context_size)
EMBED = 32             # E  (embedding_dim)
NUM_HEADS = 4
HEAD_SIZE = EMBED // NUM_HEADS
HIDDEN = 4 * EMBED     # MLP hidden (= 128)
LN_EPS = 1e-5
NEG_BIG = -1e30        # additive mask value (safer than -inf arithmetic)
BT = BATCH * CONTEXT   # 16 rows
NCOL = NUM_HEADS * BT  # 64 score columns (head-major blocks of BT)


def _layernorm(v, g, b):
    mu = jnp.mean(v, axis=-1, keepdims=True)
    var = jnp.mean((v - mu) ** 2, axis=-1, keepdims=True)
    return (v - mu) * jax.lax.rsqrt(var + LN_EPS) * g + b


def transformer_block_kernel(x_ref, wa_ref, s32_ref, s64_ref, aux_ref, o_ref):
    E, H, hs, D = EMBED, NUM_HEADS, HEAD_SIZE, HIDDEN

    x = x_ref[...]                              # (BT, E) f32

    # --- unpack slabs (all static slices: lane-0 or 128-lane / sublane aligned) ---
    w_qkv = wa_ref[:, 0:4 * E]                  # (E,128) [Wq*scale | Wk | Wv | 0]
    w1 = wa_ref[:, 4 * E:4 * E + D]             # (E,D)   128-lane-aligned split
    wp = s32_ref[0:E, :]                        # (E,E)   lane-0, sublane-aligned
    w2 = s32_ref[E:E + D, :]                    # (D,E)
    hmask = s32_ref[E + D:E + D + NCOL, :]      # (NCOL,E) 0/1: row h*BT+j keeps head-h lanes
    s_seg = s64_ref[0:NCOL, :]                  # (NCOL,NCOL) ones block-diag per head block
    add_mask = s64_ref[NCOL:NCOL + BT, :]       # (BT,NCOL) 0 / -1e30 (batch-block + causal)

    b_qkv = aux_ref[0:1, :]                     # (1,128) [bq*scale | bk | bv | 0]
    b1 = aux_ref[1:2, :]                        # (1,128)
    ln1g, ln1b = aux_ref[2:3, 0:E], aux_ref[3:4, 0:E]
    ln2g, ln2b = aux_ref[4:5, 0:E], aux_ref[5:6, 0:E]
    b2 = aux_ref[6:7, 0:E]
    bp = aux_ref[7:8, 0:E]

    # ---------------- self-attention branch ----------------
    h1 = _layernorm(x, ln1g, ln1b)
    # fused QKV: one lane-dense (BT,E)@(E,128) MXU push; lanes 96:128 are zero padding
    # (never read).  Attention scale C**-0.5 is folded into Wq / bq on the host.
    qkv = jnp.dot(h1, w_qkv, preferred_element_type=jnp.float32) + b_qkv   # (BT,128)

    q = qkv[:, 0:E]                 # lane-0 slice (free)
    k = qkv[:, E:2 * E]
    v = qkv[:, 2 * E:3 * E]

    # Block-diagonal head expansion: heads stay lane-packed; the head/batch structure
    # lives in host-built masks, so there are no per-head slice+concat relayouts.
    k_bd = jnp.concatenate([k] * H, axis=0) * hmask        # (NCOL, E)
    v_bd = jnp.concatenate([v] * H, axis=0) * hmask        # (NCOL, E)

    # scores[i, h*BT + j] = <Q_h[i], K_h[j]>  — one MXU push for all heads & batches.
    scores = jax.lax.dot_general(
        q, k_bd, dimension_numbers=(((1,), (1,)), ((), ())),
        preferred_element_type=jnp.float32) + add_mask      # (BT, NCOL)

    # Softmax per (head, batch) segment.  Subtracting the per-row max (across all
    # heads of one query) is exact for each segment (same constant per segment) and
    # numerically safe: the kept diagonal keeps every segment's denominator > 0.
    m = jnp.max(scores, axis=-1, keepdims=True)
    e = jnp.exp(scores - m)                                 # masked entries -> 0
    denom = jnp.dot(e, s_seg, preferred_element_type=jnp.float32)   # per-segment sums
    p = e / denom                                           # exact divide (tight parity)

    att = jnp.dot(p, v_bd, preferred_element_type=jnp.float32)      # (BT,E) head-lane-packed
    att = jnp.dot(att, wp, preferred_element_type=jnp.float32) + bp
    x = x + att                                             # residual 1

    # ---------------- MLP branch ----------------
    h2 = _layernorm(x, ln2g, ln2b)
    mid = jnp.maximum(jnp.dot(h2, w1, preferred_element_type=jnp.float32) + b1, 0.0)
    x = x + jnp.dot(mid, w2, preferred_element_type=jnp.float32) + b2   # residual 2

    o_ref[...] = x.astype(o_ref.dtype)


def _pack_params(p):
    """Pack weights + host-built masks into 4 lane-dense slabs (host-side, one-off)."""
    E, hs = EMBED, HEAD_SIZE
    scale = float(E) ** -0.5          # C ** -0.5, C = embedding_dim (as in source)

    # fused QKV slab: [Wq*scale | Wk | Wv | 0] + W1   (splits on 128-lane boundaries)
    zcol = jnp.zeros((E, E), jnp.float32)
    w_qkv = jnp.concatenate([p["wq"] * scale, p["wk"], p["wv"], zcol], axis=1)   # (E,128)
    w_a = jnp.concatenate([w_qkv, p["w1"]], axis=1)                              # (E,256)

    # host-built block-diag / causal structure (hoisted out of the kernel)
    q_idx = np.arange(BT)
    qb, qt = q_idx // CONTEXT, q_idx % CONTEXT
    c_idx = np.arange(NCOL) % BT
    kb, kt = c_idx // CONTEXT, c_idx % CONTEXT
    keep = (qb[:, None] == kb[None, :]) & (kt[None, :] <= qt[:, None])
    add_mask = np.where(keep, 0.0, NEG_BIG).astype(np.float32)                   # (BT,NCOL)
    lane_head = np.arange(E) // hs
    row_head = np.arange(NCOL) // BT
    hmask = (row_head[:, None] == lane_head[None, :]).astype(np.float32)         # (NCOL,E)
    s_seg = (row_head[:, None] == row_head[None, :]).astype(np.float32)          # (NCOL,NCOL)

    # 32-lane slab: [Wp ; W2 ; hmask]  — wp/w2 slices start at lane 0, sublane-aligned
    slab32 = jnp.concatenate([p["wp"], p["w2"], jnp.asarray(hmask)], axis=0)     # (224,32)
    # 64-lane slab: [S_blockdiag ; additive mask]
    slab64 = jnp.concatenate([jnp.asarray(s_seg), jnp.asarray(add_mask)], axis=0)  # (80,64)

    # aux: one 128-lane row per vector so every slice starts at lane 0
    def row(v):
        return jnp.concatenate(
            [v, jnp.zeros((1, 4 * E - v.shape[1]), jnp.float32)], axis=1)

    b_qkv = jnp.concatenate([p["bq"] * scale, p["bk"], p["bv"],
                             jnp.zeros((1, E), jnp.float32)], axis=1)            # (1,128)
    aux = jnp.concatenate([b_qkv, p["b1"], row(p["ln1_g"]), row(p["ln1_b"]),
                           row(p["ln2_g"]), row(p["ln2_b"]), row(p["b2"]),
                           row(p["bp"])], axis=0)                                # (8,128)
    return w_a, slab32, slab64, aux


def transformer_block(x, params):
    """x: (B, T, E) float32.  params: dict of weights (see init_params)."""
    B, T, E = x.shape
    w_a, slab32, slab64, aux = _pack_params(params)
    x2d = x.reshape(B * T, E)

    full = lambda arr: pl.BlockSpec(arr.shape, lambda i: (0,) * arr.ndim)

    # tiny, latency-bound call: tell XLA it is cheap so surrounding ops can overlap it
    cost = pl.CostEstimate(flops=700_000, transcendentals=1_100, bytes_accessed=92_000)

    fn = pl.pallas_call(
        transformer_block_kernel,
        out_shape=jax.ShapeDtypeStruct((B * T, E), x.dtype),
        grid_spec=pltpu.PrefetchScalarGridSpec(
            num_scalar_prefetch=0,
            grid=(1,),                       # single step: whole problem fused
            in_specs=[full(x2d), full(w_a), full(slab32), full(slab64), full(aux)],
            out_specs=pl.BlockSpec((B * T, E), lambda i: (0, 0)),
        ),
        compiler_params=pltpu.CompilerParams(
            dimension_semantics=("arbitrary",)),
        cost_estimate=cost,
    )
    return fn(x2d, w_a, slab32, slab64, aux).reshape(B, T, E)


def init_params(key):
    ks = jax.random.split(key, 16)
    E, H = EMBED, HIDDEN
    u = lambda k, shape, s: (jax.random.uniform(k, shape, jnp.float32) - 0.5) * 2 * s
    p = {
        "ln1_g": jnp.ones((1, E), jnp.float32),
        "ln1_b": jnp.zeros((1, E), jnp.float32),
        "ln2_g": jnp.ones((1, E), jnp.float32),
        "ln2_b": jnp.zeros((1, E), jnp.float32),
        # per-head Q/K/V linears packed column-wise into (E, E) so that head h
        # occupies columns [h*HEAD_SIZE : (h+1)*HEAD_SIZE] (matches torch.cat order)
        "wq": u(ks[0], (E, E), E ** -0.5), "bq": u(ks[1], (1, E), E ** -0.5),
        "wk": u(ks[2], (E, E), E ** -0.5), "bk": u(ks[3], (1, E), E ** -0.5),
        "wv": u(ks[4], (E, E), E ** -0.5), "bv": u(ks[5], (1, E), E ** -0.5),
        "wp": u(ks[6], (E, E), E ** -0.5), "bp": u(ks[7], (1, E), E ** -0.5),
        "w1": u(ks[8], (E, H), E ** -0.5), "b1": u(ks[9], (1, H), E ** -0.5),
        "w2": u(ks[10], (H, E), H ** -0.5), "b2": u(ks[11], (1, E), H ** -0.5),
    }
    return p


def reference_block(x, p):
    """Pure-JAX reference mirroring the PyTorch forward (eval mode, f32)."""
    def ln(v, g, b):
        mu = v.mean(-1, keepdims=True)
        var = ((v - mu) ** 2).mean(-1, keepdims=True)
        return (v - mu) / jnp.sqrt(var + LN_EPS) * g + b

    B, T, E = x.shape
    h = ln(x, p["ln1_g"][0], p["ln1_b"][0])
    q = h @ p["wq"] + p["bq"][0]
    k = h @ p["wk"] + p["bk"][0]
    v = h @ p["wv"] + p["bv"][0]
    mask = jnp.tril(jnp.ones((T, T), bool))
    outs = []
    for hd in range(NUM_HEADS):
        sl = slice(hd * HEAD_SIZE, (hd + 1) * HEAD_SIZE)
        wei = (q[..., sl] @ jnp.swapaxes(k[..., sl], -2, -1)) * (E ** -0.5)
        wei = jnp.where(mask, wei, -jnp.inf)
        wei = jax.nn.softmax(wei, axis=-1)
        outs.append(wei @ v[..., sl])
    att = jnp.concatenate(outs, axis=-1) @ p["wp"] + p["bp"][0]
    x = x + att
    h2 = ln(x, p["ln2_g"][0], p["ln2_b"][0])
    mid = jnp.maximum(h2 @ p["w1"] + p["b1"][0], 0.0)
    return x + mid @ p["w2"] + p["b2"][0]


if __name__ == "__main__":
    key = jax.random.PRNGKey(0)
    kx, kp = jax.random.split(key)
    x = jax.random.normal(kx, (BATCH, CONTEXT, EMBED), jnp.float32)
    params = init_params(kp)

    out = transformer_block(x, params)
    out = jax.block_until_ready(out)

    ref = reference_block(x, params)
    assert out.shape == (BATCH, CONTEXT, EMBED)
    assert jnp.allclose(out, ref, atol=1e-3, rtol=1e-3), "mismatch vs JAX reference"

    print("KERNEL_OK")
</pallas_src>

<mosaic_0001>
module attributes {stable_mosaic.version = 11 : i64} {
  func.func @transformer_block_kernel(%arg0: i32, %arg1: memref<16x32xf32, #tpu.memory_space<vmem>>, %arg2: memref<32x256xf32, #tpu.memory_space<vmem>>, %arg3: memref<224x32xf32, #tpu.memory_space<vmem>>, %arg4: memref<80x64xf32, #tpu.memory_space<vmem>>, %arg5: memref<8x128xf32, #tpu.memory_space<vmem>>, %arg6: memref<16x32xf32, #tpu.memory_space<vmem>>) attributes {dimension_semantics = [#tpu.dimension_semantics<arbitrary>], iteration_bounds = array<i64: 1>, scalar_prefetch = 0 : i64, scratch_operands = 0 : i64, tpu.core_type = #tpu.core_type<tc>, window_params = [{pipeline_mode = #tpu.pipeline_mode<synchronous>, transform_indices = @transform_0, window_bounds = array<i64: 16, 32>}, {pipeline_mode = #tpu.pipeline_mode<synchronous>, transform_indices = @transform_1, window_bounds = array<i64: 32, 256>}, {pipeline_mode = #tpu.pipeline_mode<synchronous>, transform_indices = @transform_2, window_bounds = array<i64: 224, 32>}, {pipeline_mode = #tpu.pipeline_mode<synchronous>, transform_indices = @transform_3, window_bounds = array<i64: 80, 64>}, {pipeline_mode = #tpu.pipeline_mode<synchronous>, transform_indices = @transform_4, window_bounds = array<i64: 8, 128>}, {pipeline_mode = #tpu.pipeline_mode<synchronous>, transform_indices = @transform_5, window_bounds = array<i64: 16, 32>}]} {
    %c0 = arith.constant 0 : index
    %c0_0 = arith.constant 0 : index
    %0 = vector.load %arg1[%c0, %c0_0] : memref<16x32xf32, #tpu.memory_space<vmem>>, vector<16x32xf32>
    %c0_1 = arith.constant 0 : index
    %c0_2 = arith.constant 0 : index
    %1 = vector.load %arg2[%c0_1, %c0_2] : memref<32x256xf32, #tpu.memory_space<vmem>>, vector<32x128xf32>
    %c0_3 = arith.constant 0 : index
    %c128 = arith.constant 128 : index
    %2 = vector.load %arg2[%c0_3, %c128] : memref<32x256xf32, #tpu.memory_space<vmem>>, vector<32x128xf32>
    %c0_4 = arith.constant 0 : index
    %c0_5 = arith.constant 0 : index
    %3 = vector.load %arg3[%c0_4, %c0_5] : memref<224x32xf32, #tpu.memory_space<vmem>>, vector<32x32xf32>
    %c32 = arith.constant 32 : index
    %c0_6 = arith.constant 0 : index
    %4 = vector.load %arg3[%c32, %c0_6] : memref<224x32xf32, #tpu.memory_space<vmem>>, vector<128x32xf32>
    %c160 = arith.constant 160 : index
    %c0_7 = arith.constant 0 : index
    %5 = vector.load %arg3[%c160, %c0_7] : memref<224x32xf32, #tpu.memory_space<vmem>>, vector<64x32xf32>
    %c0_8 = arith.constant 0 : index
    %c0_9 = arith.constant 0 : index
    %6 = vector.load %arg4[%c0_8, %c0_9] : memref<80x64xf32, #tpu.memory_space<vmem>>, vector<64x64xf32>
    %c64 = arith.constant 64 : index
    %c0_10 = arith.constant 0 : index
    %7 = vector.load %arg4[%c64, %c0_10] : memref<80x64xf32, #tpu.memory_space<vmem>>, vector<16x64xf32>
    %c0_11 = arith.constant 0 : index
    %c0_12 = arith.constant 0 : index
    %8 = vector.load %arg5[%c0_11, %c0_12] : memref<8x128xf32, #tpu.memory_space<vmem>>, vector<1x128xf32>
    %c1 = arith.constant 1 : index
    %c0_13 = arith.constant 0 : index
    %9 = vector.load %arg5[%c1, %c0_13] : memref<8x128xf32, #tpu.memory_space<vmem>>, vector<1x128xf32>
    %c2 = arith.constant 2 : index
    %c0_14 = arith.constant 0 : index
    %10 = vector.load %arg5[%c2, %c0_14] : memref<8x128xf32, #tpu.memory_space<vmem>>, vector<1x32xf32>
    %c3 = arith.constant 3 : index
    %c0_15 = arith.constant 0 : index
    %11 = vector.load %arg5[%c3, %c0_15] : memref<8x128xf32, #tpu.memory_space<vmem>>, vector<1x32xf32>
    %c4 = arith.constant 4 : index
    %c0_16 = arith.constant 0 : index
    %12 = vector.load %arg5[%c4, %c0_16] : memref<8x128xf32, #tpu.memory_space<vmem>>, vector<1x32xf32>
    %c5 = arith.constant 5 : index
    %c0_17 = arith.constant 0 : index
    %13 = vector.load %arg5[%c5, %c0_17] : memref<8x128xf32, #tpu.memory_space<vmem>>, vector<1x32xf32>
    %c6 = arith.constant 6 : index
    %c0_18 = arith.constant 0 : index
    %14 = vector.load %arg5[%c6, %c0_18] : memref<8x128xf32, #tpu.memory_space<vmem>>, vector<1x32xf32>
    %c7 = arith.constant 7 : index
    %c0_19 = arith.constant 0 : index
    %15 = vector.load %arg5[%c7, %c0_19] : memref<8x128xf32, #tpu.memory_space<vmem>>, vector<1x32xf32>
    %cst = arith.constant dense<0.000000e+00> : vector<16xf32>
    %16 = vector.multi_reduction <add>, %0, %cst [1] : vector<16x32xf32> to vector<16xf32>
    %17 = vector.shape_cast %16 : vector<16xf32> to vector<16x1xf32>
    %cst_20 = arith.constant 3.200000e+01 : f32
    %18 = vector.broadcast %cst_20 : f32 to vector<16x1xf32>
    %19 = arith.divf %17, %18 : vector<16x1xf32>
    %20 = vector.broadcast %19 : vector<16x1xf32> to vector<16x32xf32>
    %21 = arith.subf %0, %20 : vector<16x32xf32>
    %22 = arith.mulf %21, %21 : vector<16x32xf32>
    %cst_21 = arith.constant dense<0.000000e+00> : vector<16xf32>
    %23 = vector.multi_reduction <add>, %22, %cst_21 [1] : vector<16x32xf32> to vector<16xf32>
    %24 = vector.shape_cast %23 : vector<16xf32> to vector<16x1xf32>
    %cst_22 = arith.constant 3.200000e+01 : f32
    %25 = vector.broadcast %cst_22 : f32 to vector<16x1xf32>
    %26 = arith.divf %24, %25 : vector<16x1xf32>
    %27 = vector.broadcast %19 : vector<16x1xf32> to vector<16x32xf32>
    %28 = arith.subf %0, %27 : vector<16x32xf32>
    %cst_23 = arith.constant 9.99999974E-6 : f32
    %29 = vector.broadcast %cst_23 : f32 to vector<16x1xf32>
    %30 = arith.addf %26, %29 : vector<16x1xf32>
    %31 = math.rsqrt %30 : vector<16x1xf32>
    %32 = vector.broadcast %31 : vector<16x1xf32> to vector<16x32xf32>
    %33 = arith.mulf %28, %32 : vector<16x32xf32>
    %34 = vector.broadcast %10 : vector<1x32xf32> to vector<16x32xf32>
    %35 = arith.mulf %33, %34 : vector<16x32xf32>
    %36 = vector.broadcast %11 : vector<1x32xf32> to vector<16x32xf32>
    %37 = arith.addf %35, %36 : vector<16x32xf32>
    %cst_24 = arith.constant dense<0.000000e+00> : vector<16x128xf32>
    %38 = tpu.matmul %37, %1, %cst_24 {dimension_numbers = #tpu.dot_dimension_numbers<[1], [0], [0], [1], [0, 0, 1, 1], [], []>} : vector<16x32xf32>, vector<32x128xf32>, vector<16x128xf32> -> vector<16x128xf32>
    %39 = vector.broadcast %8 : vector<1x128xf32> to vector<16x128xf32>
    %40 = arith.addf %38, %39 : vector<16x128xf32>
    %41 = vector.extract_strided_slice %40 {offsets = [0, 0], sizes = [16, 32], strides = [1, 1]} : vector<16x128xf32> to vector<16x32xf32>
    %42 = vector.extract_strided_slice %40 {offsets = [0, 32], sizes = [16, 32], strides = [1, 1]} : vector<16x128xf32> to vector<16x32xf32>
    %43 = vector.extract_strided_slice %40 {offsets = [0, 64], sizes = [16, 32], strides = [1, 1]} : vector<16x128xf32> to vector<16x32xf32>
    %44 = tpu.concatenate %42, %42, %42, %42 in 0 : vector<16x32xf32>, vector<16x32xf32>, vector<16x32xf32>, vector<16x32xf32> -> vector<64x32xf32>
    %45 = arith.mulf %44, %5 : vector<64x32xf32>
    %46 = tpu.concatenate %43, %43, %43, %43 in 0 : vector<16x32xf32>, vector<16x32xf32>, vector<16x32xf32>, vector<16x32xf32> -> vector<64x32xf32>
    %47 = arith.mulf %46, %5 : vector<64x32xf32>
    %cst_25 = arith.constant dense<0.000000e+00> : vector<16x64xf32>
    %48 = tpu.matmul %41, %45, %cst_25 {dimension_numbers = #tpu.dot_dimension_numbers<[1], [1], [0], [0], [0, 0, 1, 0], [], []>} : vector<16x32xf32>, vector<64x32xf32>, vector<16x64xf32> -> vector<16x64xf32>
    %49 = arith.addf %48, %7 : vector<16x64xf32>
    %cst_26 = arith.constant dense<0xFF800000> : vector<16xf32>
    %50 = vector.multi_reduction <maximumf>, %49, %cst_26 [1] : vector<16x64xf32> to vector<16xf32>
    %51 = vector.shape_cast %50 : vector<16xf32> to vector<16x1xf32>
    %52 = vector.broadcast %51 : vector<16x1xf32> to vector<16x64xf32>
    %53 = arith.subf %49, %52 : vector<16x64xf32>
    %54 = math.exp %53 : vector<16x64xf32>
    %cst_27 = arith.constant dense<0.000000e+00> : vector<16x64xf32>
    %55 = tpu.matmul %54, %6, %cst_27 {dimension_numbers = #tpu.dot_dimension_numbers<[1], [0], [0], [1], [0, 0, 1, 1], [], []>} : vector<16x64xf32>, vector<64x64xf32>, vector<16x64xf32> -> vector<16x64xf32>
    %56 = arith.divf %54, %55 : vector<16x64xf32>
    %cst_28 = arith.constant dense<0.000000e+00> : vector<16x32xf32>
    %57 = tpu.matmul %56, %47, %cst_28 {dimension_numbers = #tpu.dot_dimension_numbers<[1], [0], [0], [1], [0, 0, 1, 1], [], []>} : vector<16x64xf32>, vector<64x32xf32>, vector<16x32xf32> -> vector<16x32xf32>
    %cst_29 = arith.constant dense<0.000000e+00> : vector<16x32xf32>
    %58 = tpu.matmul %57, %3, %cst_29 {dimension_numbers = #tpu.dot_dimension_numbers<[1], [0], [0], [1], [0, 0, 1, 1], [], []>} : vector<16x32xf32>, vector<32x32xf32>, vector<16x32xf32> -> vector<16x32xf32>
    %59 = vector.broadcast %15 : vector<1x32xf32> to vector<16x32xf32>
    %60 = arith.addf %58, %59 : vector<16x32xf32>
    %61 = arith.addf %0, %60 : vector<16x32xf32>
    %cst_30 = arith.constant dense<0.000000e+00> : vector<16xf32>
    %62 = vector.multi_reduction <add>, %61, %cst_30 [1] : vector<16x32xf32> to vector<16xf32>
    %63 = vector.shape_cast %62 : vector<16xf32> to vector<16x1xf32>
    %cst_31 = arith.constant 3.200000e+01 : f32
    %64 = vector.broadcast %cst_31 : f32 to vector<16x1xf32>
    %65 = arith.divf %63, %64 : vector<16x1xf32>
    %66 = vector.broadcast %65 : vector<16x1xf32> to vector<16x32xf32>
    %67 = arith.subf %61, %66 : vector<16x32xf32>
    %68 = arith.mulf %67, %67 : vector<16x32xf32>
    %cst_32 = arith.constant dense<0.000000e+00> : vector<16xf32>
    %69 = vector.multi_reduction <add>, %68, %cst_32 [1] : vector<16x32xf32> to vector<16xf32>
    %70 = vector.shape_cast %69 : vector<16xf32> to vector<16x1xf32>
    %cst_33 = arith.constant 3.200000e+01 : f32
    %71 = vector.broadcast %cst_33 : f32 to vector<16x1xf32>
    %72 = arith.divf %70, %71 : vector<16x1xf32>
    %73 = vector.broadcast %65 : vector<16x1xf32> to vector<16x32xf32>
    %74 = arith.subf %61, %73 : vector<16x32xf32>
    %cst_34 = arith.constant 9.99999974E-6 : f32
    %75 = vector.broadcast %cst_34 : f32 to vector<16x1xf32>
    %76 = arith.addf %72, %75 : vector<16x1xf32>
    %77 = math.rsqrt %76 : vector<16x1xf32>
    %78 = vector.broadcast %77 : vector<16x1xf32> to vector<16x32xf32>
    %79 = arith.mulf %74, %78 : vector<16x32xf32>
    %80 = vector.broadcast %12 : vector<1x32xf32> to vector<16x32xf32>
    %81 = arith.mulf %79, %80 : vector<16x32xf32>
    %82 = vector.broadcast %13 : vector<1x32xf32> to vector<16x32xf32>
    %83 = arith.addf %81, %82 : vector<16x32xf32>
    %cst_35 = arith.constant dense<0.000000e+00> : vector<16x128xf32>
    %84 = tpu.matmul %83, %2, %cst_35 {dimension_numbers = #tpu.dot_dimension_numbers<[1], [0], [0], [1], [0, 0, 1, 1], [], []>} : vector<16x32xf32>, vector<32x128xf32>, vector<16x128xf32> -> vector<16x128xf32>
    %85 = vector.broadcast %9 : vector<1x128xf32> to vector<16x128xf32>
    %86 = arith.addf %84, %85 : vector<16x128xf32>
    %cst_36 = arith.constant 0.000000e+00 : f32
    %87 = vector.broadcast %cst_36 : f32 to vector<16x128xf32>
    %88 = arith.maximumf %86, %87 : vector<16x128xf32>
    %cst_37 = arith.constant dense<0.000000e+00> : vector<16x32xf32>
    %89 = tpu.matmul %88, %4, %cst_37 {dimension_numbers = #tpu.dot_dimension_numbers<[1], [0], [0], [1], [0, 0, 1, 1], [], []>} : vector<16x128xf32>, vector<128x32xf32>, vector<16x32xf32> -> vector<16x32xf32>
    %90 = arith.addf %61, %89 : vector<16x32xf32>
    %91 = vector.broadcast %14 : vector<1x32xf32> to vector<16x32xf32>
    %92 = arith.addf %90, %91 : vector<16x32xf32>
    %c0_38 = arith.constant 0 : index
    %c0_39 = arith.constant 0 : index
    %93 = vector.load %arg6[%c0_38, %c0_39] : memref<16x32xf32, #tpu.memory_space<vmem>>, vector<16x32xf32>
    tpu.vector_store %arg6[%c0_38, %c0_39], %92 {strides = array<i32>} : memref<16x32xf32, #tpu.memory_space<vmem>>, vector<16x32xf32>,
    return
  }
  func.func @transform_0(%arg0: i32) -> (i32, i32) {
    %c0_i32 = arith.constant 0 : i32
    %c0_i32_0 = arith.constant 0 : i32
    %c0_i32_1 = arith.constant 0 : i32
    return %c0_i32, %c0_i32_0 : i32, i32
  }
  func.func @transform_1(%arg0: i32) -> (i32, i32) {
    %c0_i32 = arith.constant 0 : i32
    %c0_i32_0 = arith.constant 0 : i32
    %c0_i32_1 = arith.constant 0 : i32
    return %c0_i32, %c0_i32_0 : i32, i32
  }
  func.func @transform_2(%arg0: i32) -> (i32, i32) {
    %c0_i32 = arith.constant 0 : i32
    %c0_i32_0 = arith.constant 0 : i32
    %c0_i32_1 = arith.constant 0 : i32
    return %c0_i32, %c0_i32_0 : i32, i32
  }
  func.func @transform_3(%arg0: i32) -> (i32, i32) {
    %c0_i32 = arith.constant 0 : i32
    %c0_i32_0 = arith.constant 0 : i32
    %c0_i32_1 = arith.constant 0 : i32
    return %c0_i32, %c0_i32_0 : i32, i32
  }
  func.func @transform_4(%arg0: i32) -> (i32, i32) {
    %c0_i32 = arith.constant 0 : i32
    %c0_i32_0 = arith.constant 0 : i32
    %c0_i32_1 = arith.constant 0 : i32
    return %c0_i32, %c0_i32_0 : i32, i32
  }
  func.func @transform_5(%arg0: i32) -> (i32, i32) {
    %c0_i32 = arith.constant 0 : i32
    %c0_i32_0 = arith.constant 0 : i32
    %c0_i32_1 = arith.constant 0 : i32
    return %c0_i32, %c0_i32_0 : i32, i32
  }
}

</mosaic_0001>

<bundles_post_ra>
// kernel: tpu_custom_call.1
= control target key start
LH: loop header
LB: loop body
LE: loop exit
PB: predicated region body
PF: predicated region fallthrough
CT: control target
= control target key end

     0   :  { %vm77_vm0 = vcmask 261120   ;;  %s1529_s0 = inlined_call_operand.vmem [shape: f32[16,32], index: 0, kind: input, shape index: {}]   ;;  %s1530_s1 = inlined_call_operand.vmem [shape: f32[32,256], index: 1, kind: input, shape index: {}]   ;;  %s1531_s2 = inlined_call_operand.vmem [shape: f32[224,32], index: 2, kind: input, shape index: {}]   ;;  %s1532_s3 = inlined_call_operand.vmem [shape: f32[80,64], index: 3, kind: input, shape index: {}]   ;;  %s1533_s4 = inlined_call_operand.vmem [shape: f32[8,128], index: 4, kind: input, shape index: {}]   ;;  %s1534_s5 = inlined_call_operand.hbm [shape: f32[16,32], index: 5, kind: output, shape index: {}]  }
   0x1   :  { %v1221_v0 = vld [vmem:[%s1529_s0] sm:$0xff]  ;;  %v1226_v1 = vld [vmem:[%s1529_s0 + $0x8] sm:$0xff] }
   0x2   :  { %10 = vsyncpa [#allocation3], 0  ;;  %v78_v2 = vsel %vm77_vm0, %v1221_v0, 0.0  ;;  %v81_v3 = vsel %vm77_vm0, %v1226_v1, 0.0  ;;  %v26_v14 = vld [vmem:[%s1530_s1 + $0x30] sm:$0xff]  ;;  %v25_v15 = vld [vmem:[%s1530_s1 + $0x20] sm:$0xff] }
   0x3   :  { %79 = vadd.xlane.f32.xlu0 %v78_v2  ;;  %1013 = vmatprep.subr.mxu0 %v26_v14  ;;  %v24_v16 = vld [vmem:[%s1530_s1 + $0x10] sm:$0xff]  ;;  %v23_v17 = vld [vmem:[%s1530_s1] sm:$0xff]  ;;  %v1256_v19 = vld [vmem:[%s1531_s2 + $0xd8] sm:$0xff]  ;;  %s1182_s8 = smov 32   ;;  %s1183_s26 = smov 96   ;;  %vm395_vm1 = vcmask 523264  }
   0x4   :  { %1014 = vmatpush3.msra.mxu0 %v26_v14  ;;  %v1251_v18 = vld [vmem:[%s1531_s2 + $0xd0] sm:$0xff]  ;;  %v1263_v20 = vld [vmem:[%s1531_s2 + $0xc8] sm:$0xff]  ;;  %v1268_v21 = vld [vmem:[%s1531_s2 + $0xb8] sm:$0xff]  ;;  %s1184_s10 = smov 64  }
   0x5   :  { %1015 = vmatprep.subr.mxu0 %v25_v15  ;;  %v1275_v22 = vld [vmem:[%s1531_s2 + $0xc0] sm:$0xff]  ;;  %v1280_v23 = vld [vmem:[%s1531_s2 + $0xa8] sm:$0xff]  ;;  %v1287_v24 = vld [vmem:[%s1531_s2 + $0xb0] sm:$0xff] }
   0x6   :  { %1016 = vmatpush3.msra.mxu0 %v25_v15  ;;  %v1293_v25 = vld [vmem:[%s1531_s2 + $0xa0] sm:$0xff] }
   0x7   :  { %82 = vadd.xlane.f32.xlu0 %v81_v3  ;;  %1017 = vmatprep.subr.mxu0 %v24_v16  ;;  %v919_v33 = vld [vmem:[%s1533_s4 + $0x2] ss:$0 sm:$0xff]  ;;  %v920_v35 = vld [vmem:[%s1533_s4 + $0x3] ss:$0 sm:$0xff]  ;;  %v921_v44 = vld [vmem:[%s1533_s4] ss:$0 sm:$0xff] }
   0x8   :  { %1018 = vmatpush3.msra.mxu0 %v24_v16 }
   0x9   :  { %1019 = vmatprep.subr.mxu0 %v23_v17 }
   0xa   :  { %1020 = vmatpush3.msra.mxu0 %v23_v17  ;;  %v66_v17 = vld [vmem:[%s1532_s3 + $0x38] sm:$0xff] }
   0xb   :  { %1043 = vmatprep.subr.mxu0 %v66_v17 }
  0x1d   :  { %224 = vrot.lane.b32.xlu0 %v1256_v19, %s1182_s8 }
  0x21   :  { %216 = vrot.lane.b32.xlu0 %v1268_v21, %s1182_s8 }
  0x25   :  { %212 = vrot.lane.b32.xlu0 %v1280_v23, %s1182_s8 }
  0x8c   :  { %v80_v4 = vpop.xlane.xlu0 %79 }
  0x8d   :  { %v85_v5 = vmul.f32 0.03125, %v80_v4 }
  0x8f   :  { %v87_v6 = vsub.f32 %v1221_v0, %v85_v5 }
  0x90   :  { %v83_v7 = vpop.xlane.xlu0 %82 }
  0x91   :  { %v86_v8 = vmul.f32 0.03125, %v83_v7  ;;  %v89_v9 = vmul.f32 %v87_v6, %v87_v6 }
  0x93   :  { %v88_v10 = vsub.f32 %v1226_v1, %v86_v8  ;;  %v91_v11 = vsel %vm77_vm0, %v89_v9, 0.0  ;;  %v68_v9 = vld [vmem:[%s1532_s3 + $0x48] sm:$0xff] }
  0x94   :  { %92 = vadd.xlane.f32.xlu1 %v91_v11  ;;  %v225_v45 = vpop.permute.xlu0 %224  ;;  %v67_v11 = vld [vmem:[%s1532_s3 + $0x40] sm:$0xff] }
  0x95   :  { %v90_v12 = vmul.f32 %v88_v10, %v88_v10 }
  0x97   :  { %v94_v13 = vsel %vm77_vm0, %v90_v12, 0.0 }
  0x98   :  { %95 = vadd.xlane.f32.xlu1 %v94_v13  ;;  %v217_v53 = vpop.permute.xlu0 %216 }
  0x9c   :  { %v213_v58 = vpop.permute.xlu0 %212 }
  0xa9   :  { %222 = vrot.lane.b32.xlu1 %v1251_v18, %s1182_s8 }
  0xad   :  { %220 = vrot.lane.b32.xlu1 %v1263_v20, %s1182_s8 }
  0xb1   :  { %218 = vrot.lane.b32.xlu1 %v1275_v22, %s1182_s8 }
  0xb5   :  { %214 = vrot.lane.b32.xlu1 %v1287_v24, %s1182_s8 }
  0xb9   :  { %210 = vrot.lane.b32.xlu1 %v1293_v25, %s1182_s8 }
 0x11d   :  { %v93_v26 = vpop.xlane.xlu1 %92 }
 0x11e   :  { %v97_v27 = vmul.f32 0.03125, %v93_v26  ;;  %v65_v26 = vld [vmem:[%s1532_s3 + $0x30] sm:$0xff] }
 0x120   :  { %v99_v28 = vadd.f32 1e-05, %v97_v27  ;;  %v64_v27 = vld [vmem:[%s1532_s3 + $0x28] sm:$0xff] }
 0x121   :  { %v96_v29 = vpop.xlane.xlu1 %95 }
 0x122   :  { %1144 = vrsqrt.f32 %v99_v28  ;;  %v98_v30 = vmul.f32 0.03125, %v96_v29  ;;  %v63_v28 = vld [vmem:[%s1532_s3 + $0x20] sm:$0xff]  ;;  %v61_v29 = vld [vmem:[%s1532_s3 + $0x10] sm:$0xff] }
 0x124   :  { %v100_v31 = vadd.f32 1e-05, %v98_v30 }
 0x125   :  { %v223_v42 = vpop.permute.xlu1 %222 }
 0x126   :  { %1146 = vrsqrt.f32 %v100_v31 }
 0x129   :  { %v221_v43 = vpop.permute.xlu1 %220 }
 0x12d   :  { %v219_v48 = vpop.permute.xlu1 %218 }
 0x12f   :  { %v1145_v32 = vpop.eup %1144 }
 0x130   :  { %v103_v34 = vmul.f32 %v1145_v32, %v87_v6 }
 0x131   :  { %v215_v55 = vpop.permute.xlu1 %214 }
 0x132   :  { %v109_v36 = vmul.f32 %v919_v33, %v103_v34 }
 0x133   :  { %v1147_v37 = vpop.eup %1146 }
 0x134   :  { %v104_v38 = vmul.f32 %v1147_v37, %v88_v10  ;;  %v115_v39 = vadd.f32 %v920_v35, %v109_v36 }
 0x135   :  { %v211_v60 = vpop.permute.xlu1 %210 }
 0x136   :  { %v110_v40 = vmul.f32 %v919_v33, %v104_v38  ;;  %1021 = vmatprep.mubr.msk.f32.mxu0 %vm77_vm0, %v115_v39 }
 0x138   :  { %v116_v41 = vadd.f32 %v920_v35, %v110_v40 }
 0x13a   :  { %1022 = vmatmul.mubr.msk.f32.vlgmr.msra.gmra.mxu0 %vm77_vm0, %v116_v41 }
 0x13b   :  { %1044 = vmatpush3.msra.mxu0 %v66_v17 }
 0x13c   :  { %1045 = vmatprep.subr.mxu0 %v65_v26 }
 0x13d   :  { %1046 = vmatpush3.msra.mxu0 %v65_v26 }
 0x13e   :  { %1047 = vmatprep.subr.mxu0 %v64_v27 }
 0x13f   :  { %1048 = vmatpush3.msra.mxu0 %v64_v27 }
 0x140   :  { %1049 = vmatprep.subr.mxu0 %v63_v28 }
 0x141   :  { %1050 = vmatpush3.msra.mxu0 %v63_v28 }
 0x1fa   :  { %v1023_v46 = vpop.f32.mrf.mxu0 }
 0x1fb   :  { %v1307_v47 = vadd.f32 %v1023_v46, %v921_v44 }
 0x1fc   :  { %v193_v49 = vpop.f32.mrf.mxu0 }
 0x1fd   :  { %v1309_v50 = vadd.f32 %v921_v44, %v193_v49  ;;  %v241_v51 = vmul.f32 %v225_v45, %v1307_v47  ;;  %v239_v54 = vmul.f32 %v221_v43, %v1307_v47  ;;  %v237_v57 = vmul.f32 %v217_v53, %v1307_v47 }
 0x1fe   :  { %v235_v61 = vmul.f32 %v213_v58, %v1307_v47 }
 0x1ff   :  { %1040 = vmatprep.mubr.msk.f32.mxu1 %vm77_vm0, %v1309_v50  ;;  %296 = vrot.lane.b32.xlu0 %v241_v51, %s1183_s26  ;;  %v240_v52 = vmul.f32 %v223_v42, %v1309_v50  ;;  %v238_v56 = vmul.f32 %v219_v48, %v1309_v50  ;;  %v236_v59 = vmul.f32 %v215_v55, %v1309_v50 }
 0x200   :  { %v234_v62 = vmul.f32 %v211_v60, %v1309_v50 }
 0x201   :  { %294 = vrot.lane.b32.xlu1 %v240_v52, %s1183_s26 }
 0x203   :  { %292 = vrot.lane.b32.xlu0 %v239_v54, %s1183_s26 }
 0x205   :  { %290 = vrot.lane.b32.xlu1 %v238_v56, %s1183_s26 }
 0x207   :  { %288 = vrot.lane.b32.xlu0 %v237_v57, %s1183_s26  ;;  %v34_v57 = vld [vmem:[%s1531_s2 + $0x18] sm:$0xff] }
 0x209   :  { %286 = vrot.lane.b32.xlu1 %v236_v59, %s1183_s26 }
 0x20b   :  { %284 = vrot.lane.b32.xlu0 %v235_v61, %s1183_s26 }
 0x20d   :  { %282 = vrot.lane.b32.xlu1 %v234_v62, %s1183_s26 }
 0x271   :  { %v297_v63 = vpop.permute.xlu0 %296 }
 0x272   :  { %1024 = vmatprep.subr.msk.mxu1 %vm77_vm0, %v297_v63 }
 0x273   :  { %v295_v2 = vpop.permute.xlu1 %294  ;;  %1025 = vmatpush3.xpose.msk.msra.mxu1 %vm77_vm0, %v297_v63 }
 0x274   :  { %1026 = vmatprep.subr.msk.mxu1 %vm77_vm0, %v295_v2 }
 0x275   :  { %v293_v3 = vpop.permute.xlu0 %292 }
 0x277   :  { %1027 = vmatpush3.xpose.msk.msra.mxu1 %vm77_vm0, %v295_v2  ;;  %v291_v4 = vpop.permute.xlu1 %290  ;;  %v33_v2 = vld [vmem:[%s1531_s2 + $0x10] sm:$0xff] }
 0x278   :  { %1028 = vmatprep.subr.msk.mxu1 %vm77_vm0, %v293_v3 }
 0x279   :  { %v289_v5 = vpop.permute.xlu0 %288 }
 0x27b   :  { %1029 = vmatpush3.xpose.msk.msra.mxu1 %vm77_vm0, %v293_v3  ;;  %v287_v6 = vpop.permute.xlu1 %286  ;;  %v32_v3 = vld [vmem:[%s1531_s2 + $0x8] sm:$0xff] }
 0x27c   :  { %1030 = vmatprep.subr.msk.mxu1 %vm77_vm0, %v291_v4 }
 0x27d   :  { %v285_v7 = vpop.permute.xlu0 %284 }
 0x27f   :  { %1031 = vmatpush3.xpose.msk.msra.mxu1 %vm77_vm0, %v291_v4  ;;  %v283_v8 = vpop.permute.xlu1 %282  ;;  %v31_v4 = vld [vmem:[%s1531_s2] sm:$0xff] }
 0x280   :  { %1032 = vmatprep.subr.msk.mxu1 %vm77_vm0, %v289_v5 }
 0x283   :  { %1033 = vmatpush3.xpose.msk.msra.mxu1 %vm77_vm0, %v289_v5 }
 0x284   :  { %1034 = vmatprep.subr.msk.mxu1 %vm77_vm0, %v287_v6 }
 0x287   :  { %1035 = vmatpush3.xpose.msk.msra.mxu1 %vm77_vm0, %v287_v6 }
 0x288   :  { %1036 = vmatprep.subr.msk.mxu1 %vm77_vm0, %v285_v7 }
 0x28b   :  { %1037 = vmatpush3.xpose.msk.msra.mxu1 %vm77_vm0, %v285_v7  ;;  %v938_v7 = vld [vmem:[%s1533_s4 + $0x7] ss:$0 sm:$0xff] }
 0x28c   :  { %1038 = vmatprep.subr.msk.mxu1 %vm77_vm0, %v283_v8 }
 0x28f   :  { %1039 = vmatpush3.xpose.msk.msra.mxu1 %vm77_vm0, %v283_v8 }
 0x292   :  { %1041 = vmatmul.mubr.msk.f32.vlgmr.msra.gmra.mxu1 %vm77_vm0, %v1307_v47 }
 0x352   :  { %v1042_v10 = vpop.f32.mrf.mxu1 }
 0x353   :  { %v392_v12 = vadd.f32 %v1042_v10, %v68_v9 }
 0x354   :  { %v386_v13 = vpop.f32.mrf.mxu1 }
 0x355   :  { %v387_v14 = vadd.f32 %v386_v13, %v67_v11  ;;  %v399_v15 = vsel %vm395_vm1, %v392_v12, -inf }
 0x356   :  { %400 = vmax.xlane.f32.xlu1 %v399_v15 }
 0x357   :  { %v396_v16 = vsel %vm395_vm1, %v387_v14, -inf }
 0x358   :  { %397 = vmax.xlane.f32.xlu0 %v396_v16 }
 0x367   :  { %254 = vrot.lane.b32.xlu1 %v1251_v18, %s1184_s10  ;;  %v62_v18 = vld [vmem:[%s1532_s3 + $0x18] sm:$0xff] }
 0x368   :  { %1051 = vmatprep.subr.mxu0 %v62_v18 }
 0x369   :  { %1052 = vmatpush3.msra.mxu0 %v62_v18 }
 0x36a   :  { %1053 = vmatprep.subr.mxu0 %v61_v29 }
 0x36b   :  { %250 = vrot.lane.b32.xlu1 %v1275_v22, %s1184_s10  ;;  %v60_v22 = vld [vmem:[%s1532_s3 + $0x8] sm:$0xff]  ;;  %1054 = vmatpush3.msra.mxu0 %v61_v29 }
 0x36c   :  { %1055 = vmatprep.subr.mxu0 %v60_v22 }
 0x36d   :  { %1056 = vmatpush3.msra.mxu0 %v60_v22 }
 0x36e   :  { %256 = vrot.lane.b32.xlu0 %v1256_v19, %s1184_s10  ;;  %v59_v19 = vld [vmem:[%s1532_s3] sm:$0xff] }
 0x36f   :  { %246 = vrot.lane.b32.xlu1 %v1287_v24, %s1184_s10  ;;  %1057 = vmatprep.subr.mxu0 %v59_v19 }
 0x370   :  { %1058 = vmatpush3.msra.mxu0 %v59_v19  ;;  %v30_v19 = vld [vmem:[%s1530_s1 + $0x38] sm:$0xff] }
 0x372   :  { %252 = vrot.lane.b32.xlu0 %v1263_v20, %s1184_s10 }
 0x373   :  { %242 = vrot.lane.b32.xlu1 %v1293_v25, %s1184_s10 }
 0x376   :  { %248 = vrot.lane.b32.xlu0 %v1268_v21, %s1184_s10 }
 0x37a   :  { %244 = vrot.lane.b32.xlu0 %v1280_v23, %s1184_s10 }
 0x3df   :  { %v401_v24 = vpop.xlane.xlu1 %400 }
 0x3e0   :  { %v403_v30 = vsub.f32 %v392_v12, %v401_v24  ;;  %v29_v24 = vld [vmem:[%s1530_s1 + $0x28] sm:$0xff] }
 0x3e1   :  { %v398_v20 = vpop.xlane.xlu0 %397 }
 0x3e2   :  { %v402_v31 = vsub.f32 %v387_v14, %v398_v20  ;;  %v406_v32 = vmul.f32 1.442695, %v403_v30  ;;  %v28_v30 = vld [vmem:[%s1530_s1 + $0x18] sm:$0xff]  ;;  %v27_v20 = vld [vmem:[%s1530_s1 + $0x8] sm:$0xff] }
 0x3e3   :  { %v255_v33 = vpop.permute.xlu1 %254 }
 0x3e4   :  { %v404_v34 = vmul.f32 1.442695, %v402_v31  ;;  %v272_v35 = vmul.f32 %v255_v33, %v1309_v50  ;;  %v50_v31 = vld [vmem:[%s1531_s2 + $0x98] sm:$0xff]  ;;  %v48_v33 = vld [vmem:[%s1531_s2 + $0x88] sm:$0xff] }
 0x3e5   :  { %v257_v36 = vpop.permute.xlu0 %256  ;;  %1103 = vmatprep.subr.mxu1 %v50_v31 }
 0x3e6   :  { %1148 = vpow2.f32 %v404_v34  ;;  %v273_v25 = vmul.f32 %v257_v36, %v1307_v47  ;;  %513 = vrot.lane.b32.xlu1 %v272_v35, %s1184_s10  ;;  %1104 = vmatpush3.msra.mxu1 %v50_v31  ;;  %v47_v34 = vld [vmem:[%s1531_s2 + $0x80] sm:$0xff]  ;;  %v46_v35 = vld [vmem:[%s1531_s2 + $0x78] sm:$0xff]  ;;  %v45_v36 = vld [vmem:[%s1531_s2 + $0x70] sm:$0xff] }
 0x3e7   :  { %1150 = vpow2.f32 %v406_v32  ;;  %v251_v21 = vpop.permute.xlu1 %250  ;;  %v49_v32 = vld [vmem:[%s1531_s2 + $0x90] sm:$0xff] }
 0x3e8   :  { %v270_v37 = vmul.f32 %v251_v21, %v1309_v50  ;;  %515 = vrot.lane.b32.xlu0 %v273_v25, %s1184_s10  ;;  %1105 = vmatprep.subr.mxu1 %v49_v32  ;;  %v44_v25 = vld [vmem:[%s1531_s2 + $0x68] sm:$0xff]  ;;  %v43_v21 = vld [vmem:[%s1531_s2 + $0x60] sm:$0xff] }
 0x3e9   :  { %v253_v23 = vpop.permute.xlu0 %252  ;;  %1106 = vmatpush3.msra.mxu1 %v49_v32 }
 0x3ea   :  { %v271_v38 = vmul.f32 %v253_v23, %v1307_v47  ;;  %509 = vrot.lane.b32.xlu1 %v270_v37, %s1184_s10  ;;  %1107 = vmatprep.subr.mxu1 %v48_v33  ;;  %v42_v37 = vld [vmem:[%s1531_s2 + $0x58] sm:$0xff]  ;;  %v41_v23 = vld [vmem:[%s1531_s2 + $0x50] sm:$0xff] }
 0x3eb   :  { %v247_v39 = vpop.permute.xlu1 %246  ;;  %1108 = vmatpush3.msra.mxu1 %v48_v33 }
 0x3ec   :  { %v268_v40 = vmul.f32 %v247_v39, %v1309_v50  ;;  %511 = vrot.lane.b32.xlu0 %v271_v38, %s1184_s10  ;;  %1109 = vmatprep.subr.mxu1 %v47_v34  ;;  %v40_v38 = vld [vmem:[%s1531_s2 + $0x48] sm:$0xff]  ;;  %v39_v39 = vld [vmem:[%s1531_s2 + $0x40] sm:$0xff] }
 0x3ed   :  { %v249_v41 = vpop.permute.xlu0 %248  ;;  %1110 = vmatpush3.msra.mxu1 %v47_v34 }
 0x3ee   :  { %v269_v42 = vmul.f32 %v249_v41, %v1307_v47  ;;  %505 = vrot.lane.b32.xlu1 %v268_v40, %s1184_s10  ;;  %1111 = vmatprep.subr.mxu1 %v46_v35 }
 0x3ef   :  { %v243_v43 = vpop.permute.xlu1 %242  ;;  %1112 = vmatpush3.msra.mxu1 %v46_v35 }
 0x3f0   :  { %v266_v44 = vmul.f32 %v243_v43, %v1309_v50  ;;  %507 = vrot.lane.b32.xlu0 %v269_v42, %s1184_s10  ;;  %1113 = vmatprep.subr.mxu1 %v45_v36 }
 0x3f1   :  { %v245_v45 = vpop.permute.xlu0 %244  ;;  %1114 = vmatpush3.msra.mxu1 %v45_v36 }
 0x3f2   :  { %v267_v46 = vmul.f32 %v245_v45, %v1307_v47  ;;  %501 = vrot.lane.b32.xlu1 %v266_v44, %s1184_s10  ;;  %1115 = vmatprep.subr.mxu1 %v44_v25 }
 0x3f3   :  { %v1149_v48 = vpop.eup %1148  ;;  %1116 = vmatpush3.msra.mxu1 %v44_v25 }
 0x3f4   :  { %v1151_v49 = vpop.eup %1150  ;;  %1059 = vmatprep.mubr.msk.f32.mxu0 %vm395_vm1, %v1149_v48  ;;  %503 = vrot.lane.b32.xlu0 %v267_v46, %s1184_s10 }
 0x3f5   :  { %1060 = vmatmul.mubr.msk.f32.vlgmr.msra.gmra.mxu0 %vm395_vm1, %v1151_v49  ;;  %1117 = vmatprep.subr.mxu1 %v43_v21 }
 0x3f6   :  { %1118 = vmatpush3.msra.mxu1 %v43_v21 }
 0x3f7   :  { %1119 = vmatprep.subr.mxu1 %v42_v37 }
 0x3f8   :  { %1120 = vmatpush3.msra.mxu1 %v42_v37 }
 0x3f9   :  { %1121 = vmatprep.subr.mxu1 %v41_v23 }
 0x3fa   :  { %1122 = vmatpush3.msra.mxu1 %v41_v23 }
 0x3fb   :  { %1123 = vmatprep.subr.mxu1 %v40_v38 }
 0x3fc   :  { %1124 = vmatpush3.msra.mxu1 %v40_v38 }
 0x3fd   :  { %1125 = vmatprep.subr.mxu1 %v39_v39 }
 0x3fe   :  { %1126 = vmatpush3.msra.mxu1 %v39_v39 }
 0x458   :  { %v514_v51 = vpop.permute.xlu1 %513 }
 0x45a   :  { %v516_v52 = vpop.permute.xlu0 %515 }
 0x45b   :  { %1062 = vmatprep.subr.mxu0 %v516_v52 }
 0x45c   :  { %v510_v53 = vpop.permute.xlu1 %509  ;;  %1063 = vmatpush3.msra.mxu0 %v516_v52 }
 0x45d   :  { %1064 = vmatprep.subr.mxu0 %v514_v51 }
 0x45e   :  { %1065 = vmatpush3.msra.mxu0 %v514_v51  ;;  %v512_v50 = vpop.permute.xlu0 %511  ;;  %v942_v51 = vld [vmem:[%s1533_s4 + $0x5] ss:$0 sm:$0xff] }
 0x45f   :  { %1066 = vmatprep.subr.mxu0 %v512_v50 }
 0x460   :  { %1067 = vmatpush3.msra.mxu0 %v512_v50  ;;  %v506_v47 = vpop.permute.xlu1 %505 }
 0x461   :  { %1068 = vmatprep.subr.mxu0 %v510_v53 }
 0x462   :  { %1069 = vmatpush3.msra.mxu0 %v510_v53  ;;  %v508_v54 = vpop.permute.xlu0 %507 }
 0x463   :  { %1070 = vmatprep.subr.mxu0 %v508_v54 }
 0x464   :  { %1071 = vmatpush3.msra.mxu0 %v508_v54  ;;  %v502_v56 = vpop.permute.xlu1 %501 }
 0x465   :  { %1072 = vmatprep.subr.mxu0 %v506_v47 }
 0x466   :  { %1073 = vmatpush3.msra.mxu0 %v506_v47  ;;  %v504_v55 = vpop.permute.xlu0 %503 }
 0x467   :  { %1074 = vmatprep.subr.mxu0 %v504_v55 }
 0x468   :  { %1075 = vmatpush3.msra.mxu0 %v504_v55 }
 0x469   :  { %1076 = vmatprep.subr.mxu0 %v502_v56 }
 0x46a   :  { %1077 = vmatpush3.msra.mxu0 %v502_v56  ;;  %v38_v56 = vld [vmem:[%s1531_s2 + $0x38] sm:$0xff] }
 0x46b   :  { %1081 = vmatprep.subr.mxu0 %v34_v57  ;;  %1127 = vmatprep.subr.mxu1 %v38_v56 }
 0x46c   :  { %1128 = vmatpush3.msra.mxu1 %v38_v56 }
 0x4b5   :  { %v1061_v58 = vpop.f32.mrf.mxu0 }
 0x4b6   :  { %1152 = vrcp.f32 %v1061_v58  ;;  %v36_v58 = vld [vmem:[%s1531_s2 + $0x28] sm:$0xff] }
 0x4b7   :  { %v480_v59 = vpop.f32.mrf.mxu0 }
 0x4b8   :  { %1154 = vrcp.f32 %v480_v59  ;;  %v35_v59 = vld [vmem:[%s1531_s2 + $0x20] sm:$0xff] }
 0x4c3   :  { %v1153_v60 = vpop.eup %1152 }
 0x4c4   :  { %v492_v63 = vmul.f32 %v1153_v60, %v1151_v49  ;;  %v943_v60 = vld [vmem:[%s1533_s4 + $0x1] ss:$0 sm:$0xff] }
 0x4c5   :  { %v1155_v61 = vpop.eup %1154 }
 0x4c6   :  { %v490_v62 = vmul.f32 %v1155_v61, %v1149_v48  ;;  %v941_v48 = vld [vmem:[%s1533_s4 + $0x4] ss:$0 sm:$0xff] }
 0x4c8   :  { %1078 = vmatprep.mubr.msk.f32.mxu0 %vm395_vm1, %v490_v62 }
 0x4c9   :  { %1079 = vmatmul.mubr.msk.f32.vlgmr.msra.gmra.mxu0 %vm395_vm1, %v492_v63 }
 0x4ca   :  { %1082 = vmatpush3.msra.mxu0 %v34_v57  ;;  %v37_v57 = vld [vmem:[%s1531_s2 + $0x30] sm:$0xff]  ;;  %s1185_s2 = smov [#allocation2]  }
 0x4cb   :  { %1083 = vmatprep.subr.mxu0 %v33_v2  ;;  %1129 = vmatprep.subr.mxu1 %v37_v57  ;;  %s908_s23 = sshll.u32 %s1185_s2, 4  ;;  %s909_s23 = int_to_ptr.vmem [resolvable:$true] %s908_s23 }
 0x4cc   :  { %1084 = vmatpush3.msra.mxu0 %v33_v2  ;;  %1130 = vmatpush3.msra.mxu1 %v37_v57  ;;  %s1160_s24 = scalar_lea.vmem %s909_s23, 256  ;;  %p1165_p1 = scmp.lt.s32.totalorder %s909_s23, %s909_s23 }
 0x4cd   :  { %1085 = vmatprep.subr.mxu0 %v32_v3  ;;  %1131 = vmatprep.subr.mxu1 %v36_v58  ;;  %p1161_p0 = scmp.ne.s32.totalorder %s909_s23, %s1160_s24  ;;  %p1166_p2 = scmp.lt.s32.totalorder %s1160_s24, %s1160_s24 }
 0x4ce   :  { %1086 = vmatpush3.msra.mxu0 %v32_v3  ;;  %1132 = vmatpush3.msra.mxu1 %v36_v58 }
 0x4cf   :  { %1087 = vmatprep.subr.mxu0 %v31_v4  ;;  %1133 = vmatprep.subr.mxu1 %v35_v59  ;;  %p1167_p3 = por %p1166_p2, %p1165_p1 }
 0x4d0   :  { %1088 = vmatpush3.msra.mxu0 %v31_v4  ;;  %1134 = vmatpush3.msra.mxu1 %v35_v59 }
 0x4d1   :  { %1092 = vmatprep.subr.mxu0 %v30_v19  ;;  %p1168_p4 = pnand %p1167_p3, %p1161_p0 }
 0x589   :  { %v1080_v5 = vpop.f32.mrf.mxu0 }
 0x58b   :  { %v597_v6 = vpop.f32.mrf.mxu0 }
 0x58c   :  { %1089 = vmatprep.mubr.msk.f32.mxu0 %vm77_vm0, %v597_v6 }
 0x58d   :  { %1090 = vmatmul.mubr.msk.f32.vlgmr.msra.gmra.mxu0 %vm77_vm0, %v1080_v5  ;;  %v946_v5 = vld [vmem:[%s1533_s4 + $0x6] ss:$0 sm:$0xff] }
 0x58e   :  { %1093 = vmatpush3.msra.mxu0 %v30_v19 }
 0x58f   :  { %1094 = vmatprep.subr.mxu0 %v29_v24 }
 0x590   :  { %1095 = vmatpush3.msra.mxu0 %v29_v24 }
 0x591   :  { %1096 = vmatprep.subr.mxu0 %v28_v30 }
 0x592   :  { %1097 = vmatpush3.msra.mxu0 %v28_v30 }
 0x593   :  { %1098 = vmatprep.subr.mxu0 %v27_v20 }
 0x594   :  { %1099 = vmatpush3.msra.mxu0 %v27_v20 }
 0x64d   :  { %v1091_v8 = vpop.f32.mrf.mxu0 }
 0x64e   :  { %v688_v9 = vadd.f32 %v1091_v8, %v938_v7 }
 0x64f   :  { %v682_v10 = vpop.f32.mrf.mxu0 }
 0x650   :  { %v1425_v11 = vadd.f32 %v688_v9, %v1226_v1  ;;  %v683_v12 = vadd.f32 %v938_v7, %v682_v10 }
 0x652   :  { %v1428_v13 = vadd.f32 %v683_v12, %v1221_v0  ;;  %v696_v14 = vsel %vm77_vm0, %v1425_v11, 0.0 }
 0x653   :  { %697 = vadd.xlane.f32.xlu1 %v696_v14 }
 0x654   :  { %v693_v15 = vsel %vm77_vm0, %v1428_v13, 0.0 }
 0x655   :  { %694 = vadd.xlane.f32.xlu0 %v693_v15 }
 0x6dc   :  { %v698_v16 = vpop.xlane.xlu1 %697 }
 0x6dd   :  { %v700_v17 = vmul.f32 0.03125, %v698_v16 }
 0x6de   :  { %v695_v26 = vpop.xlane.xlu0 %694 }
 0x6df   :  { %v699_v27 = vmul.f32 0.03125, %v695_v26  ;;  %v1435_v28 = vsub.f32 %v1425_v11, %v700_v17 }
 0x6e1   :  { %v1438_v1 = vsub.f32 %v1428_v13, %v699_v27  ;;  %v704_v29 = vmul.f32 %v1435_v28, %v1435_v28 }
 0x6e3   :  { %v703_v0 = vmul.f32 %v1438_v1, %v1438_v1  ;;  %v708_v22 = vsel %vm77_vm0, %v704_v29, 0.0 }
 0x6e5   :  { %v705_v18 = vsel %vm77_vm0, %v703_v0, 0.0 }
 0x6e6   :  { %706 = vadd.xlane.f32.xlu0 %v705_v18 }
 0x6ea   :  { %709 = vadd.xlane.f32.xlu0 %v708_v22 }
 0x76f   :  { %v707_v40 = vpop.xlane.xlu0 %706 }
 0x770   :  { %v711_v41 = vmul.f32 0.03125, %v707_v40 }
 0x772   :  { %v713_v42 = vadd.f32 1e-05, %v711_v41 }
 0x773   :  { %v710_v43 = vpop.xlane.xlu0 %709 }
 0x774   :  { %1156 = vrsqrt.f32 %v713_v42  ;;  %v712_v44 = vmul.f32 0.03125, %v710_v43 }
 0x776   :  { %v714_v45 = vadd.f32 1e-05, %v712_v44 }
 0x778   :  { %1158 = vrsqrt.f32 %v714_v45 }
 0x781   :  { %v1157_v46 = vpop.eup %1156 }
 0x782   :  { %v717_v49 = vmul.f32 %v1157_v46, %v1438_v1 }
 0x784   :  { %v723_v52 = vmul.f32 %v941_v48, %v717_v49 }
 0x785   :  { %v1159_v53 = vpop.eup %1158 }
 0x786   :  { %v718_v50 = vmul.f32 %v1159_v53, %v1435_v28  ;;  %v729_v47 = vadd.f32 %v942_v51, %v723_v52 }
 0x788   :  { %v724_v54 = vmul.f32 %v941_v48, %v718_v50  ;;  %1100 = vmatprep.mubr.msk.f32.mxu0 %vm77_vm0, %v729_v47 }
 0x78a   :  { %v730_v55 = vadd.f32 %v942_v51, %v724_v54 }
 0x78c   :  { %1101 = vmatmul.mubr.msk.f32.vlgmr.msra.gmra.mxu0 %vm77_vm0, %v730_v55 }
 0x84c   :  { %v1102_v61 = vpop.f32.mrf.mxu0 }
 0x84d   :  { %v813_v62 = vadd.f32 %v1102_v61, %v943_v60 }
 0x84e   :  { %v807_v63 = vpop.f32.mrf.mxu0 }
 0x84f   :  { %v808_v2 = vadd.f32 %v943_v60, %v807_v63  ;;  %v817_v4 = vmax.f32 %v813_v62, 0.0 }
 0x851   :  { %v816_v3 = vmax.f32 %v808_v2, 0.0 }
 0x853   :  { %1135 = vmatprep.mubr.f32.mxu1 %v816_v3 }
 0x854   :  { %1136 = vmatmul.mubr.f32.vlgmr.msra.gmra.mxu1 %v817_v4 }
 0x914   :  { %v1137_v6 = vpop.f32.mrf.mxu1 }
 0x915   :  { %v894_v7 = vadd.f32 %v1137_v6, %v1425_v11 }
 0x916   :  { %v884_v8 = vpop.f32.mrf.mxu1 }
 0x917   :  { %v900_v9 = vadd.f32 %v946_v5, %v894_v7  ;;  %v893_v10 = vadd.f32 %v884_v8, %v1428_v13 }
 0x919   :  { %902 = vst.msk [vmem:[#allocation2 + $0x8] sm:$0xff] %vm77_vm0, %v900_v9  ;;  %v899_v12 = vadd.f32 %v946_v5, %v893_v10 }
 0x91b   :  { %901 = vst.msk [vmem:[#allocation2] sm:$0xff] %vm77_vm0, %v899_v12 }
 0x91c   :  { %1171 = shalt.err (!%p1168_p4)
}
 0x91d   :  { %s1186_s4 = smov 128   ;;  %s1187_s25 = smov 8  }
 0x91e   :  { %914 = dma.vmem_to_hbm [thread:$0]  %s909_s23, 256, %s1534_s5, [#allocation3], %s1186_s4, %s1186_s4, %s1187_s25  }
 0x91f   :  { %1180 = dma.done.wait [#allocation3], 256  }
 0x920   :  { %1181 = vsyncadd [#allocation3], 4294967040 }
 0x921   :  { %918 = vsyncpa [#allocation3], 1 }

</bundles_post_ra>
